<compile_context>
chip_gen: v7x
topology: tpu7x:2x2x1
jax: 0.10.0
libtpu: 0.0.40
codegen_flags: <defaults>
</compile_context>

<pallas_src>
import functools
import math

import jax
import jax.numpy as jnp
from jax import lax
from jax.experimental import pallas as pl
from jax.experimental.pallas import tpu as pltpu


def _round_up(n, m):
    return ((n + m - 1) // m) * m


def _gelu(x, approximate=False):
    if approximate:
        # tanh GELU: native EUP op (frees VALU slots, useful on v5e). Opt-in —
        # slight numeric deviation from torch's exact erf GELU.
        c = math.sqrt(2.0 / math.pi)
        return 0.5 * x * (1.0 + jnp.tanh(c * (x + 0.044715 * x * x * x)))
    # Matches torch.nn.GELU() default (exact, erf-based).  Computed in f32.
    return 0.5 * x * (1.0 + lax.erf(x * (1.0 / math.sqrt(2.0))))


def ffn_kernel(x_ref, w1_ref, b1_ref, w2_ref, b2_ref, o_ref, *scratch,
               acc_in_out, approximate):
    # Grid axes: i = row tile (parallel), j = hidden slab (reduction, last).
    acc_ref = o_ref if acc_in_out else scratch[0]
    j = pl.program_id(1)

    @pl.when(j == 0)
    def _init():
        acc_ref[...] = jnp.zeros_like(acc_ref)

    # (tm, d_model) @ (d_model, th) -> f32 (tm, th) on the MXU (bf16 inputs).
    h = jnp.dot(x_ref[...], w1_ref[...], preferred_element_type=jnp.float32)
    # Bias add + GELU in f32 (safe on v5e; v6e/v7x bf16 epilogue left as a
    # follow-up).  Dropout: identity in eval mode.
    h = _gelu(h + b1_ref[...], approximate)
    # (tm, th) @ (th, d_model) -> accumulate f32 partial output over hidden slabs.
    acc_ref[...] += jnp.dot(h.astype(w2_ref.dtype), w2_ref[...],
                            preferred_element_type=jnp.float32)

    @pl.when(j == pl.num_programs(1) - 1)
    def _finalize():
        # Final bias in f32, single cast at the store.  Dropout: identity.
        o_ref[...] = (acc_ref[...] + b2_ref[...]).astype(o_ref.dtype)


def _vmem_budget_bytes():
    """Scoped-VMEM budget (with headroom vs physical) per TPU generation."""
    try:
        kind = jax.devices()[0].device_kind.lower()
    except Exception:
        return 48 * 1024 * 1024
    if "v7" in kind:
        return 48 * 1024 * 1024            # 64 MiB physical per TensorCore
    if "v6" in kind or "trillium" in kind or "v5 lite" in kind or "v5e" in kind:
        return 96 * 1024 * 1024            # 128 MiB physical
    return 64 * 1024 * 1024                # v4 / v5p / unknown: conservative


def _tile_vmem_bytes(tm, th, d_model, in_isz, out_isz, use_acc_scratch):
    x_blk = tm * d_model * in_isz
    w1_blk = d_model * th * in_isz
    w2_blk = th * d_model * in_isz
    b_blk = (th + d_model) * 4
    o_blk = tm * d_model * out_isz
    dbuf = 2 * (x_blk + w1_blk + w2_blk + b_blk + o_blk)   # double-buffered pipeline
    acc = tm * d_model * 4 if use_acc_scratch else 0       # f32 accumulator scratch
    h_tmp = tm * th * (4 + in_isz)                         # f32 GELU temp + bf16 copy
    return dbuf + acc + h_tmp


def _select_tiles(M, d_model, d_hidden, in_isz, out_isz, use_acc_scratch,
                  budget, tm_req):
    # Row tile: multiple of 16 (bf16 sublane packing), prefer 128/256-aligned,
    # and at least 2 row tiles when M allows (megacore "parallel" axis sharding).
    tm_hi = max(16, min(tm_req, _round_up(pl.cdiv(M, 2), 16)))
    if tm_hi >= 128:
        tm_hi = (tm_hi // 128) * 128
    tm_cands = [t for t in (tm_hi, 1024, 512, 256, 128, 64, 32, 16) if t <= tm_hi]
    tm_cands = list(dict.fromkeys(tm_cands))

    # Hidden slab: full hidden dim first (weights-resident: W1/W2 fetched exactly
    # once for the whole grid), then lane-aligned divisors of the padded hidden
    # dim, largest first (big contiguous DMA chunks).
    dh_pad = _round_up(d_hidden, 128)
    th_cands = [d_hidden] + [t for t in range(dh_pad, 127, -128)
                             if dh_pad % t == 0 and t != d_hidden]

    for th in th_cands:
        for tm in tm_cands:
            if _tile_vmem_bytes(tm, th, d_model, in_isz, out_isz,
                                use_acc_scratch) <= budget:
                return tm, th
    return 16, min(dh_pad, 128)    # last resort (extreme d_model vs tiny budget)


def feed_forward(x, w1, b1, w2, b2, *, tm=1024, compute_dtype=jnp.bfloat16,
                 approx_gelu=False, vmem_budget=None):
    """x: [B, S, d_model]; w1: [d_model, d_hidden]; w2: [d_hidden, d_model]."""
    B, S, d_model = x.shape
    d_hidden = w1.shape[1]
    M = B * S
    out_dtype = x.dtype

    in_isz = jnp.dtype(compute_dtype).itemsize
    out_isz = jnp.dtype(out_dtype).itemsize
    # f32 output -> accumulate directly into o_ref, drop the f32 scratch.
    acc_in_out = jnp.dtype(out_dtype) == jnp.dtype(jnp.float32)

    if vmem_budget is None:
        vmem_budget = _vmem_budget_bytes()
    tile_budget = int(vmem_budget * 0.8)   # headroom for compiler-internal scratch

    tm, th = _select_tiles(M, d_model, d_hidden, in_isz, out_isz,
                           not acc_in_out, tile_budget, tm)

    # Pad the hidden dim with zero units only when the streamed slab doesn't
    # divide it (zero weight columns/rows contribute exactly 0 to the output).
    if th == d_hidden or d_hidden % th == 0:
        dh = d_hidden
        w1p, b1p, w2p = w1, b1, w2
    else:
        dh = _round_up(d_hidden, th)
        w1p = jnp.pad(w1, ((0, 0), (0, dh - d_hidden)))
        b1p = jnp.pad(b1, (0, dh - d_hidden))
        w2p = jnp.pad(w2, ((0, dh - d_hidden), (0, 0)))

    grid_i = pl.cdiv(M, tm)      # ragged last row tile: OOB stores are masked
    grid_j = dh // th

    # bf16 MXU inputs; biases kept f32 so the f32 epilogue stays f32.
    x2 = x.reshape(M, d_model).astype(compute_dtype)
    w1c = w1p.astype(compute_dtype)
    w2c = w2p.astype(compute_dtype)
    b1_2 = b1p.reshape(1, dh).astype(jnp.float32)
    b2_2 = b2.reshape(1, d_model).astype(jnp.float32)

    # Weight HBM traffic: once total when resident (grid_j == 1), else once per
    # row tile (the j axis restarts for every i).
    w_fetches = 1 if grid_j == 1 else grid_i
    cost = pl.CostEstimate(
        flops=int(4 * M * d_model * dh),
        transcendentals=int(M * dh),
        bytes_accessed=int(M * d_model * in_isz                       # x
                           + w_fetches * 2 * d_model * dh * in_isz    # W1, W2
                           + (dh + d_model) * 4                       # b1, b2
                           + M * d_model * out_isz),                  # y
    )

    kernel = functools.partial(ffn_kernel, acc_in_out=acc_in_out,
                               approximate=approx_gelu)
    scratch_shapes = [] if acc_in_out else [pltpu.VMEM((tm, d_model), jnp.float32)]

    out = pl.pallas_call(
        kernel,
        out_shape=jax.ShapeDtypeStruct((M, d_model), out_dtype),
        grid_spec=pltpu.PrefetchScalarGridSpec(
            num_scalar_prefetch=0,
            grid=(grid_i, grid_j),
            in_specs=[
                pl.BlockSpec((tm, d_model), lambda i, j: (i, 0)),   # x row tile
                pl.BlockSpec((d_model, th), lambda i, j: (0, j)),   # W1 column slab
                pl.BlockSpec((1, th), lambda i, j: (0, j)),         # b1 slab (f32)
                pl.BlockSpec((th, d_model), lambda i, j: (j, 0)),   # W2 row slab
                pl.BlockSpec((1, d_model), lambda i, j: (0, 0)),    # b2 (f32)
            ],
            out_specs=pl.BlockSpec((tm, d_model), lambda i, j: (i, 0)),
            scratch_shapes=scratch_shapes,
        ),
        compiler_params=pltpu.CompilerParams(
            dimension_semantics=("parallel", "arbitrary"),
            vmem_limit_bytes=int(vmem_budget)),
        cost_estimate=cost,
    )(x2, w1c, b1_2, w2c, b2_2)

    return out.reshape(B, S, d_model)


def init_params(key, d_model, d_hidden, dtype=jnp.float32):
    """Deterministic init mimicking nn.Linear's uniform(-1/sqrt(in), 1/sqrt(in))."""
    k1, k2, k3, k4 = jax.random.split(key, 4)
    lim1 = 1.0 / math.sqrt(d_model)
    lim2 = 1.0 / math.sqrt(d_hidden)
    # PyTorch stores weight as (out, in); we build (in, out) directly (= W^T).
    w1 = jax.random.uniform(k1, (d_model, d_hidden), dtype, -lim1, lim1)
    b1 = jax.random.uniform(k2, (d_hidden,), dtype, -lim1, lim1)
    w2 = jax.random.uniform(k3, (d_hidden, d_model), dtype, -lim2, lim2)
    b2 = jax.random.uniform(k4, (d_model,), dtype, -lim2, lim2)
    return w1, b1, w2, b2


if __name__ == "__main__":
    B, S = 2, 8
    d_model, d_hidden = 128, 256  # lane-aligned feature dims

    key = jax.random.PRNGKey(0)
    kx, kp = jax.random.split(key)
    x = jax.random.normal(kx, (B, S, d_model), jnp.float32)
    w1, b1, w2, b2 = init_params(kp, d_model, d_hidden)

    y = feed_forward(x, w1, b1, w2, b2)
    y = jax.block_until_ready(y)

    # Reference 1: same math as the kernel (bf16 MXU inputs, f32 accumulate and
    # f32 bias/exact-GELU epilogue), pure JAX — tight tolerance.
    xb = x.reshape(-1, d_model).astype(jnp.bfloat16)
    h_ref = jnp.dot(xb, w1.astype(jnp.bfloat16),
                    preferred_element_type=jnp.float32) + b1
    h_ref = _gelu(h_ref)
    y_ref = jnp.dot(h_ref.astype(jnp.bfloat16), w2.astype(jnp.bfloat16),
                    preferred_element_type=jnp.float32) + b2
    y_ref = y_ref.reshape(B, S, d_model).astype(x.dtype)
    assert jnp.allclose(y, y_ref, atol=2e-3, rtol=2e-3), "mismatch vs bf16 reference"

    # Reference 2: full-f32 torch semantics — loose tolerance (bf16 MXU inputs).
    h32 = _gelu(x.reshape(-1, d_model) @ w1 + b1)
    y32 = (h32 @ w2 + b2).reshape(B, S, d_model)
    assert jnp.allclose(y, y32, atol=5e-2, rtol=5e-2), "mismatch vs f32 reference"

    print("KERNEL_OK")
</pallas_src>

<mosaic_0001>
module attributes {stable_mosaic.version = 11 : i64} {
  func.func @ffn_kernel(%arg0: i32, %arg1: i32, %arg2: memref<16x128xbf16, #tpu.memory_space<vmem>>, %arg3: memref<128x256xbf16, #tpu.memory_space<vmem>>, %arg4: memref<1x256xf32, #tpu.memory_space<vmem>>, %arg5: memref<256x128xbf16, #tpu.memory_space<vmem>>, %arg6: memref<1x128xf32, #tpu.memory_space<vmem>>, %arg7: memref<16x128xf32, #tpu.memory_space<vmem>>) attributes {dimension_semantics = [#tpu.dimension_semantics<parallel>, #tpu.dimension_semantics<arbitrary>], iteration_bounds = array<i64: 1, 1>, scalar_prefetch = 0 : i64, scratch_operands = 0 : i64, tpu.core_type = #tpu.core_type<tc>, window_params = [{transform_indices = @transform_0, window_bounds = array<i64: 16, 128>}, {transform_indices = @transform_1, window_bounds = array<i64: 128, 256>}, {transform_indices = @transform_2, window_bounds = array<i64: 1, 256>}, {transform_indices = @transform_3, window_bounds = array<i64: 256, 128>}, {pipeline_mode = #tpu.pipeline_mode<synchronous>, transform_indices = @transform_4, window_bounds = array<i64: 1, 128>}, {transform_indices = @transform_5, window_bounds = array<i64: 16, 128>}]} {
    %c0_i32 = arith.constant 0 : i32
    %0 = arith.cmpi eq, %arg1, %c0_i32 : i32
    %1 = arith.extui %0 : i1 to i32
    %c0_i32_0 = arith.constant 0 : i32
    %2 = arith.cmpi ne, %1, %c0_i32_0 : i32
    scf.if %2 {
      %cst_18 = arith.constant 0.000000e+00 : f32
      %26 = vector.broadcast %cst_18 : f32 to vector<16x128xf32>
      %c0_19 = arith.constant 0 : index
      %c0_20 = arith.constant 0 : index
      %27 = vector.load %arg7[%c0_19, %c0_20] : memref<16x128xf32, #tpu.memory_space<vmem>>, vector<16x128xf32>
      tpu.vector_store %arg7[%c0_19, %c0_20], %26 {strides = array<i32>} : memref<16x128xf32, #tpu.memory_space<vmem>>, vector<16x128xf32>,
    } else {
    }
    %c0 = arith.constant 0 : index
    %c0_1 = arith.constant 0 : index
    %3 = vector.load %arg2[%c0, %c0_1] : memref<16x128xbf16, #tpu.memory_space<vmem>>, vector<16x128xbf16>
    %c0_2 = arith.constant 0 : index
    %c0_3 = arith.constant 0 : index
    %4 = vector.load %arg3[%c0_2, %c0_3] : memref<128x256xbf16, #tpu.memory_space<vmem>>, vector<128x256xbf16>
    %cst = arith.constant dense<0.000000e+00> : vector<16x256xf32>
    %5 = tpu.matmul %3, %4, %cst {dimension_numbers = #tpu.dot_dimension_numbers<[1], [0], [0], [1], [0, 0, 1, 1], [], []>} : vector<16x128xbf16>, vector<128x256xbf16>, vector<16x256xf32> -> vector<16x256xf32>
    %c0_4 = arith.constant 0 : index
    %c0_5 = arith.constant 0 : index
    %6 = vector.load %arg4[%c0_4, %c0_5] : memref<1x256xf32, #tpu.memory_space<vmem>>, vector<1x256xf32>
    %7 = vector.broadcast %6 : vector<1x256xf32> to vector<16x256xf32>
    %8 = arith.addf %5, %7 : vector<16x256xf32>
    %cst_6 = arith.constant 5.000000e-01 : f32
    %9 = vector.broadcast %cst_6 : f32 to vector<16x256xf32>
    %10 = arith.mulf %9, %8 : vector<16x256xf32>
    %cst_7 = arith.constant 0.707106769 : f32
    %11 = vector.broadcast %cst_7 : f32 to vector<16x256xf32>
    %12 = arith.mulf %8, %11 : vector<16x256xf32>
    %13 = math.erf %12 : vector<16x256xf32>
    %cst_8 = arith.constant 1.000000e+00 : f32
    %14 = vector.broadcast %cst_8 : f32 to vector<16x256xf32>
    %15 = arith.addf %14, %13 : vector<16x256xf32>
    %16 = arith.mulf %10, %15 : vector<16x256xf32>
    %c0_9 = arith.constant 0 : index
    %c0_10 = arith.constant 0 : index
    %17 = vector.load %arg7[%c0_9, %c0_10] : memref<16x128xf32, #tpu.memory_space<vmem>>, vector<16x128xf32>
    %18 = arith.truncf %16 : vector<16x256xf32> to vector<16x256xbf16>
    %c0_11 = arith.constant 0 : index
    %c0_12 = arith.constant 0 : index
    %19 = vector.load %arg5[%c0_11, %c0_12] : memref<256x128xbf16, #tpu.memory_space<vmem>>, vector<256x128xbf16>
    %cst_13 = arith.constant dense<0.000000e+00> : vector<16x128xf32>
    %20 = tpu.matmul %18, %19, %cst_13 {dimension_numbers = #tpu.dot_dimension_numbers<[1], [0], [0], [1], [0, 0, 1, 1], [], []>} : vector<16x256xbf16>, vector<256x128xbf16>, vector<16x128xf32> -> vector<16x128xf32>
    %21 = arith.addf %17, %20 : vector<16x128xf32>
    %c0_14 = arith.constant 0 : index
    %c0_15 = arith.constant 0 : index
    %22 = vector.load %arg7[%c0_14, %c0_15] : memref<16x128xf32, #tpu.memory_space<vmem>>, vector<16x128xf32>
    tpu.vector_store %arg7[%c0_14, %c0_15], %21 {strides = array<i32>} : memref<16x128xf32, #tpu.memory_space<vmem>>, vector<16x128xf32>,
    %c0_i32_16 = arith.constant 0 : i32
    %23 = arith.cmpi eq, %arg1, %c0_i32_16 : i32
    %24 = arith.extui %23 : i1 to i32
    %c0_i32_17 = arith.constant 0 : i32
    %25 = arith.cmpi ne, %24, %c0_i32_17 : i32
    scf.if %25 {
      %c0_18 = arith.constant 0 : index
      %c0_19 = arith.constant 0 : index
      %26 = vector.load %arg7[%c0_18, %c0_19] : memref<16x128xf32, #tpu.memory_space<vmem>>, vector<16x128xf32>
      %c0_20 = arith.constant 0 : index
      %c0_21 = arith.constant 0 : index
      %27 = vector.load %arg6[%c0_20, %c0_21] : memref<1x128xf32, #tpu.memory_space<vmem>>, vector<1x128xf32>
      %28 = vector.broadcast %27 : vector<1x128xf32> to vector<16x128xf32>
      %29 = arith.addf %26, %28 : vector<16x128xf32>
      %c0_22 = arith.constant 0 : index
      %c0_23 = arith.constant 0 : index
      %30 = vector.load %arg7[%c0_22, %c0_23] : memref<16x128xf32, #tpu.memory_space<vmem>>, vector<16x128xf32>
      tpu.vector_store %arg7[%c0_22, %c0_23], %29 {strides = array<i32>} : memref<16x128xf32, #tpu.memory_space<vmem>>, vector<16x128xf32>,
    } else {
    }
    return
  }
  func.func @transform_0(%arg0: i32, %arg1: i32) -> (i32, i32) {
    %c0_i32 = arith.constant 0 : i32
    %c0_i32_0 = arith.constant 0 : i32
    return %arg0, %c0_i32 : i32, i32
  }
  func.func @transform_1(%arg0: i32, %arg1: i32) -> (i32, i32) {
    %c0_i32 = arith.constant 0 : i32
    %c0_i32_0 = arith.constant 0 : i32
    return %c0_i32, %arg1 : i32, i32
  }
  func.func @transform_2(%arg0: i32, %arg1: i32) -> (i32, i32) {
    %c0_i32 = arith.constant 0 : i32
    %c0_i32_0 = arith.constant 0 : i32
    return %c0_i32, %arg1 : i32, i32
  }
  func.func @transform_3(%arg0: i32, %arg1: i32) -> (i32, i32) {
    %c0_i32 = arith.constant 0 : i32
    %c0_i32_0 = arith.constant 0 : i32
    return %arg1, %c0_i32 : i32, i32
  }
  func.func @transform_4(%arg0: i32, %arg1: i32) -> (i32, i32) {
    %c0_i32 = arith.constant 0 : i32
    %c0_i32_0 = arith.constant 0 : i32
    %c0_i32_1 = arith.constant 0 : i32
    return %c0_i32, %c0_i32_0 : i32, i32
  }
  func.func @transform_5(%arg0: i32, %arg1: i32) -> (i32, i32) {
    %c0_i32 = arith.constant 0 : i32
    %c0_i32_0 = arith.constant 0 : i32
    return %arg0, %c0_i32 : i32, i32
  }
}

</mosaic_0001>

<bundles_post_ra>
// kernel: tpu_custom_call.1
= control target key start
LH: loop header
LB: loop body
LE: loop exit
PB: predicated region body
PF: predicated region fallthrough
CT: control target
= control target key end

     0   :  { %10 = vsyncpa [#allocation3], 0  ;;  %s859_s0 = inlined_call_operand.hbm [shape: bf16[16,128], index: 0, kind: input, shape index: {}]   ;;  %s860_s1 = inlined_call_operand.hbm [shape: bf16[128,256], index: 1, kind: input, shape index: {}]   ;;  %s861_s2 = inlined_call_operand.hbm [shape: f32[1,256], index: 2, kind: input, shape index: {}]   ;;  %s862_s3 = inlined_call_operand.hbm [shape: bf16[256,128], index: 3, kind: input, shape index: {}]   ;;  %s863_s4 = inlined_call_operand.hbm [shape: f32[1,128], index: 4, kind: input, shape index: {}]   ;;  %s864_s5 = inlined_call_operand.hbm [shape: f32[16,128], index: 5, kind: output, shape index: {}]  }
   0x1   :  { %11 = vsyncpa [#allocation6], 0 }
   0x2   :  { %12 = vsyncpa [#allocation9], 0 }
   0x3   :  { %13 = vsyncpa [#allocation4], 0  ;;  %s740_s18 = smov [#allocation5]   ;;  %s600_s22 = scalar_lea.hbm %s860_s1, 2048 }
   0x4   :  { %s31_s19 = sshll.u32 %s740_s18, 4  ;;  %p601_p0 = scmp.ne.s32.totalorder %s860_s1, %s600_s22  ;;  %s32_s19 = int_to_ptr.vmem [resolvable:$true] %s31_s19 }
   0x5   :  { %p604_p1 = scmp.lt.u32.totalorder %s600_s22, %s860_s1 }
   0x7   :  { %p606_p2 = pnand %p604_p1, %p601_p0 }
   0x9   :  { %609 = shalt.err (!%p606_p2)
}
   0xa   :  { %s610_s27 = scalar_lea.vmem %s32_s19, 2048  ;;  %p615_p4 = scmp.lt.s32.totalorder %s32_s19, %s32_s19 }
   0xb   :  { %p611_p3 = scmp.ne.s32.totalorder %s32_s19, %s610_s27  ;;  %p616_p5 = scmp.lt.s32.totalorder %s610_s27, %s610_s27 }
   0xd   :  { %p617_p6 = por %p616_p5, %p615_p4 }
   0xf   :  { %p618_p7 = pnand %p617_p6, %p611_p3 }
  0x11   :  { %621 = shalt.err (!%p618_p7)
}
  0x12   :  { %s741_s28 = smov 128   ;;  %s742_s29 = smov 8  }
  0x13   :  { %37 = dma.hbm_to_vmem [thread:$0]  %s860_s1, 2048, %s32_s19, [#allocation6], %s741_s28, %s741_s28, %s742_s29  }
  0x14   :  { %s743_s7 = smov [#allocation8]   ;;  %s744_s9 = smov [#allocation2]  }
  0x15   :  { %s53_s8 = sshll.u32 %s743_s7, 4  ;;  %s19_s10 = sshll.u32 %s744_s9, 4  ;;  %s54_s8 = int_to_ptr.vmem [resolvable:$true] %s53_s8  ;;  %s20_s10 = int_to_ptr.vmem [resolvable:$true] %s19_s10 }
  0x16   :  { %s622_s13 = scalar_lea.hbm %s862_s3, 2048 }
  0x17   :  { %p623_p8 = scmp.ne.s32.totalorder %s862_s3, %s622_s13  ;;  %p626_p9 = scmp.lt.u32.totalorder %s622_s13, %s862_s3 }
  0x19   :  { %p628_p10 = pnand %p626_p9, %p623_p8 }
  0x1b   :  { %631 = shalt.err (!%p628_p10)
}
  0x1c   :  { %s632_s1 = scalar_lea.vmem %s54_s8, 2048  ;;  %p637_p12 = scmp.lt.s32.totalorder %s54_s8, %s54_s8 }
  0x1d   :  { %p633_p11 = scmp.ne.s32.totalorder %s54_s8, %s632_s1  ;;  %p638_p13 = scmp.lt.s32.totalorder %s632_s1, %s632_s1 }
  0x1f   :  { %p639_p0 = por %p638_p13, %p637_p12 }
  0x21   :  { %p640_p1 = pnand %p639_p0, %p633_p11 }
  0x23   :  { %643 = shalt.err (!%p640_p1)
}
  0x24   :  { %s745_s18 = smov 64   ;;  %s746_s19 = smov 4  }
  0x25   :  { %59 = dma.hbm_to_vmem [thread:$0]  %s862_s3, 2048, %s54_s8, [#allocation9], %s745_s18, %s745_s18, %s746_s19  }
  0x26   :  { %s644_s24 = scalar_lea.hbm %s859_s0, 128 }
  0x27   :  { %p645_p2 = scmp.ne.s32.totalorder %s859_s0, %s644_s24  ;;  %p648_p3 = scmp.lt.u32.totalorder %s644_s24, %s859_s0 }
  0x29   :  { %p650_p4 = pnand %p648_p3, %p645_p2 }
  0x2b   :  { %653 = shalt.err (!%p650_p4)
}
  0x2c   :  { %s654_s6 = scalar_lea.vmem %s20_s10, 128  ;;  %p659_p6 = scmp.lt.s32.totalorder %s20_s10, %s20_s10 }
  0x2d   :  { %p655_p5 = scmp.ne.s32.totalorder %s20_s10, %s654_s6  ;;  %p660_p7 = scmp.lt.s32.totalorder %s654_s6, %s654_s6 }
  0x2f   :  { %p661_p8 = por %p660_p7, %p659_p6 }
  0x31   :  { %p662_p9 = pnand %p661_p8, %p655_p5 }
  0x33   :  { %665 = shalt.err (!%p662_p9)
}
  0x34   :  { %25 = dma.hbm_to_vmem [thread:$0]  %s859_s0, 128, %s20_s10, [#allocation3], %s745_s18, %s745_s18, %s746_s19  }
  0x35   :  { %s747_s8 = smov [#allocation7]   ;;  %s748_s11 = smov [#allocation10]  }
  0x36   :  { %s44_s9 = sshll.u32 %s747_s8, 4  ;;  %s66_s12 = sshll.u32 %s748_s11, 4  ;;  %s45_s9 = int_to_ptr.vmem [resolvable:$true] %s44_s9  ;;  %s67_s12 = int_to_ptr.vmem [resolvable:$true] %s66_s12 }
  0x37   :  { %s666_s15 = scalar_lea.hbm %s861_s2, 32 }
  0x38   :  { %p667_p10 = scmp.ne.s32.totalorder %s861_s2, %s666_s15  ;;  %p670_p11 = scmp.lt.u32.totalorder %s666_s15, %s861_s2 }
  0x3a   :  { %p672_p12 = pnand %p670_p11, %p667_p10 }
  0x3c   :  { %675 = shalt.err (!%p672_p12)
}
  0x3d   :  { %s676_s0 = scalar_lea.vmem %s45_s9, 32  ;;  %p681_p0 = scmp.lt.s32.totalorder %s45_s9, %s45_s9 }
  0x3e   :  { %p677_p13 = scmp.ne.s32.totalorder %s45_s9, %s676_s0  ;;  %p682_p1 = scmp.lt.s32.totalorder %s676_s0, %s676_s0 }
  0x40   :  { %p683_p2 = por %p682_p1, %p681_p0 }
  0x42   :  { %p684_p3 = pnand %p683_p2, %p677_p13 }
  0x44   :  { %687 = shalt.err (!%p684_p3)
}
  0x45   :  { %47 = dma.hbm_to_vmem [thread:$0]  %s861_s2, 32, %s45_s9, [#allocation6]  }
  0x46   :  { %s688_s22 = scalar_lea.hbm %s863_s4, 16 }
  0x47   :  { %p689_p4 = scmp.ne.s32.totalorder %s863_s4, %s688_s22  ;;  %p692_p5 = scmp.lt.u32.totalorder %s688_s22, %s863_s4 }
  0x49   :  { %p694_p6 = pnand %p692_p5, %p689_p4 }
  0x4b   :  { %697 = shalt.err (!%p694_p6)
}
  0x4c   :  { %s698_s27 = scalar_lea.vmem %s67_s12, 16  ;;  %s702_s30 = scalar_lea.vmem %s67_s12, 32 }
  0x4d   :  { %p699_p7 = scmp.ne.s32.totalorder %s67_s12, %s698_s27  ;;  %p703_p8 = scmp.lt.s32.totalorder %s67_s12, %s67_s12 }
  0x4e   :  { %p704_p9 = scmp.lt.s32.totalorder %s702_s30, %s698_s27 }
  0x50   :  { %p705_p10 = por %p704_p9, %p703_p8 }
  0x52   :  { %p706_p11 = pnand %p705_p10, %p699_p7 }
  0x54   :  { %709 = shalt.err (!%p706_p11)
}
  0x55   :  { %69 = dma.hbm_to_vmem [thread:$0]  %s863_s4, 16, %s67_s12, [#allocation9]  }
  0x56   :  { %732 = dma.done.wait [#allocation3], 128  }
  0x57   :  { %733 = vsyncadd [#allocation3], 4294967168 }
  0x58   :  { %734 = dma.done.wait [#allocation6], 2080  }
  0x59   :  { %735 = vsyncadd [#allocation6], 4294965216 }
  0x5a   :  { %736 = dma.done.wait [#allocation9], 2064  }
  0x5b   :  { %737 = vsyncadd [#allocation9], 4294965232  ;;  %v749_v0 = vmov 0   ;;  %v551_v1 = vld [vmem:[#allocation5 + $0x4] ss:$8 sps:$4 sm:$0xff]   ;;  %v575_v21 = vld [vmem:[#allocation2] sm:$0xff]   ;;  %v112_v34 = vlaneseq }
  0x5c   :  { %240 = vmatprep.mubr.bf16.mxu0 %v749_v0  ;;  %v553_v2 = vld [vmem:[#allocation5] ss:$8 sps:$4 sm:$0xff]   ;;  %208 = vmatprep.subr.bf16.mxu0 %v551_v1  ;;  %v554_v3 = vld [vmem:[#allocation5 + $0x14] ss:$8 sps:$4 sm:$0xff]   ;;  %v556_v4 = vld [vmem:[#allocation5 + $0x10] ss:$8 sps:$4 sm:$0xff]  }
  0x5d   :  { %209 = vmatpush1.bf16.msra.mxu0 %v553_v2  ;;  %v557_v5 = vld [vmem:[#allocation5 + $0x24] ss:$8 sps:$4 sm:$0xff]   ;;  %v559_v6 = vld [vmem:[#allocation5 + $0x20] ss:$8 sps:$4 sm:$0xff]   ;;  %v560_v7 = vld [vmem:[#allocation5 + $0x34] ss:$8 sps:$4 sm:$0xff]  }
  0x5e   :  { %210 = vmatprep.subr.bf16.mxu0 %v554_v3  ;;  %v562_v8 = vld [vmem:[#allocation5 + $0x30] ss:$8 sps:$4 sm:$0xff]   ;;  %v563_v9 = vld [vmem:[#allocation5 + $0x44] ss:$8 sps:$4 sm:$0xff]   ;;  %v565_v11 = vld [vmem:[#allocation5 + $0x40] ss:$8 sps:$4 sm:$0xff]  }
  0x5f   :  { %v576_v10 = vld [vmem:[#allocation8 + $0x40] sm:$0xff]   ;;  %v578_v13 = vld [vmem:[#allocation8 + $0x48] sm:$0xff]   ;;  %v566_v14 = vld [vmem:[#allocation5 + $0x54] ss:$8 sps:$4 sm:$0xff]   ;;  %v113_v35 = vshrl.u32 %v112_v34, 7  ;;  %s750_s4 = smov [#allocation11]  }
  0x60   :  { %v577_v12 = vld [vmem:[#allocation8] sm:$0xff]   ;;  %517 = vmatprep.subr.bf16.mxu1 %v576_v10  ;;  %v579_v15 = vld [vmem:[#allocation8 + $0x8] sm:$0xff]   ;;  %v572_v19 = vld [vmem:[#allocation5 + $0x74] ss:$8 sps:$4 sm:$0xff]   ;;  %s469_s3 = sshll.u32 %s750_s4, 4  ;;  %s470_s3 = int_to_ptr.vmem [resolvable:$true] %s469_s3 }
  0x61   :  { %211 = vmatpush1.bf16.msra.mxu0 %v556_v4  ;;  %518 = vmatpush3.bf16.msra.mxu1 %v577_v12  ;;  %v568_v16 = vld [vmem:[#allocation5 + $0x50] ss:$8 sps:$4 sm:$0xff]   ;;  %v569_v17 = vld [vmem:[#allocation5 + $0x64] ss:$8 sps:$4 sm:$0xff]   ;;  %v571_v18 = vld [vmem:[#allocation5 + $0x60] ss:$8 sps:$4 sm:$0xff]   ;;  %p715_p13 = scmp.lt.s32.totalorder %s470_s3, %s470_s3 }
  0x62   :  { %212 = vmatprep.subr.bf16.mxu0 %v557_v5  ;;  %519 = vmatprep.subr.bf16.mxu1 %v578_v13  ;;  %v574_v20 = vld [vmem:[#allocation5 + $0x70] ss:$8 sps:$4 sm:$0xff]   ;;  %v584_v26 = vld [vmem:[#allocation8 + $0x60] sm:$0xff]   ;;  %v114_v36 = vsub.s32 0, %v113_v35  ;;  %v110_v37 = vld [vmem:[#allocation7] sm:$0x3] }
  0x63   :  { %v580_v22 = vld [vmem:[#allocation8 + $0x50] sm:$0xff]   ;;  %v582_v24 = vld [vmem:[#allocation8 + $0x58] sm:$0xff]   ;;  %v585_v27 = vld [vmem:[#allocation8 + $0x20] sm:$0xff]   ;;  %v118_v38 = vsub.s32 1, %v113_v35  ;;  %s710_s7 = scalar_lea.vmem %s470_s3, 256 }
  0x64   :  { %v581_v23 = vld [vmem:[#allocation8 + $0x10] sm:$0xff]   ;;  %v583_v25 = vld [vmem:[#allocation8 + $0x18] sm:$0xff]   ;;  %v586_v28 = vld [vmem:[#allocation8 + $0x68] sm:$0xff]   ;;  %v115_v39 = vrot.slane %v110_v37, %v114_v36  ;;  %p711_p12 = scmp.ne.s32.totalorder %s470_s3, %s710_s7  ;;  %p716_p0 = scmp.lt.s32.totalorder %s710_s7, %s710_s7 }
  0x65   :  { %213 = vmatpush1.bf16.msra.mxu0 %v559_v6  ;;  %520 = vmatpush3.bf16.msra.mxu1 %v579_v15  ;;  %v587_v29 = vld [vmem:[#allocation8 + $0x28] sm:$0xff]   ;;  %v588_v30 = vld [vmem:[#allocation8 + $0x70] sm:$0xff]   ;;  %v590_v32 = vld [vmem:[#allocation8 + $0x78] sm:$0xff]   ;;  %v119_v40 = vrot.slane %v110_v37, %v118_v38 }
  0x66   :  { %214 = vmatprep.subr.bf16.mxu0 %v560_v7  ;;  %521 = vmatprep.subr.bf16.mxu1 %v580_v22  ;;  %v589_v31 = vld [vmem:[#allocation8 + $0x30] sm:$0xff]   ;;  %v591_v33 = vld [vmem:[#allocation8 + $0x38] sm:$0xff]   ;;  %v516_v12 = vld [vmem:[#allocation10] ss:$0 sm:$0xff]  ;;  %p717_p1 = por %p716_p0, %p715_p13 }
  0x68   :  { %p718_p2 = pnand %p717_p1, %p711_p12 }
  0x69   :  { %215 = vmatpush1.bf16.msra.mxu0 %v562_v8  ;;  %522 = vmatpush3.bf16.msra.mxu1 %v581_v23 }
  0x6a   :  { %216 = vmatprep.subr.bf16.mxu0 %v563_v9  ;;  %523 = vmatprep.subr.bf16.mxu1 %v582_v24 }
  0x6d   :  { %217 = vmatpush1.bf16.msra.mxu0 %v565_v11  ;;  %524 = vmatpush3.bf16.msra.mxu1 %v583_v25 }
  0x6e   :  { %218 = vmatprep.subr.bf16.mxu0 %v566_v14  ;;  %525 = vmatprep.subr.bf16.mxu1 %v584_v26 }
  0x71   :  { %219 = vmatpush1.bf16.msra.mxu0 %v568_v16  ;;  %526 = vmatpush3.bf16.msra.mxu1 %v585_v27 }
  0x72   :  { %220 = vmatprep.subr.bf16.mxu0 %v569_v17  ;;  %527 = vmatprep.subr.bf16.mxu1 %v586_v28 }
  0x75   :  { %221 = vmatpush1.bf16.msra.mxu0 %v571_v18  ;;  %528 = vmatpush3.bf16.msra.mxu1 %v587_v29 }
  0x76   :  { %222 = vmatprep.subr.bf16.mxu0 %v572_v19  ;;  %529 = vmatprep.subr.bf16.mxu1 %v588_v30 }
  0x79   :  { %223 = vmatpush1.bf16.msra.mxu0 %v574_v20  ;;  %530 = vmatpush3.bf16.msra.mxu1 %v589_v31 }
  0x7a   :  { %531 = vmatprep.subr.bf16.mxu1 %v590_v32 }
  0x7c   :  { %241 = vmatmul.mubr.bf16.vlgmr.msra.gmra.mrb[0].mxu0 %v575_v21 }
  0x7d   :  { %532 = vmatpush3.bf16.msra.mxu1 %v591_v33 }
 0x14f   :  { %v242_v41 = vpop.f32.mrb[0].mxu0 }
 0x150   :  { %v243_v42 = vadd.f32 %v242_v41, %v115_v39  ;;  %v244_v43 = vpop.f32.mrb[1].mxu0 }
 0x151   :  { %v245_v44 = vadd.f32 %v244_v43, %v119_v40  ;;  %v246_v45 = vpop.f32.mrb[2].mxu0 }
 0x152   :  { %v255_v46 = vmul.f32 0.70710677, %v243_v42  ;;  %v247_v47 = vadd.f32 %v246_v45, %v115_v39  ;;  %v248_v48 = vpop.f32.mrb[3].mxu0  ;;  %v251_v59 = vmul.f32 0.5, %v243_v42 }
 0x153   :  { %v256_v49 = vmul.f32 0.70710677, %v245_v44  ;;  %v249_v50 = vadd.f32 %v248_v48, %v119_v40  ;;  %v252_v62 = vmul.f32 0.5, %v245_v44 }
 0x154   :  { %592 = verf.f32 %v255_v46  ;;  %v257_v51 = vmul.f32 0.70710677, %v247_v47  ;;  %v253_v60 = vmul.f32 0.5, %v247_v47 }
 0x155   :  { %594 = verf.f32 %v256_v49  ;;  %v258_v52 = vmul.f32 0.70710677, %v249_v50  ;;  %v254_v63 = vmul.f32 0.5, %v249_v50 }
 0x156   :  { %596 = verf.f32 %v257_v51 }
 0x157   :  { %598 = verf.f32 %v258_v52 }
 0x15e   :  { %v593_v53 = vpop.eup %592 }
 0x15f   :  { %v595_v54 = vpop.eup %594  ;;  %v263_v55 = vadd.f32 1.0, %v593_v53 }
 0x160   :  { %v597_v56 = vpop.eup %596  ;;  %v264_v57 = vadd.f32 1.0, %v595_v54 }
 0x161   :  { %v599_v58 = vpop.eup %598  ;;  %v265_v61 = vadd.f32 1.0, %v597_v56  ;;  %v267_v1 = vmul.f32 %v263_v55, %v251_v59 }
 0x162   :  { %v266_v0 = vadd.f32 1.0, %v599_v58  ;;  %v268_v3 = vmul.f32 %v264_v57, %v252_v62 }
 0x163   :  { %v269_v2 = vmul.f32 %v265_v61, %v253_v60 }
 0x164   :  { %v270_v4 = vmul.f32 %v266_v0, %v254_v63 }
 0x165   :  { %v273_v5 = vpack.c.bf16 %v269_v2, %v267_v1 }
 0x166   :  { %v274_v6 = vpack.c.bf16 %v270_v4, %v268_v3 }
 0x168   :  { %435 = vmatprep.mubr.bf16.mxu1 %v274_v6 }
 0x169   :  { %436 = vmatmul.mubr.bf16.vlgmr.msra.gmra.mrb[0].mxu1 %v273_v5 }
 0x23c   :  { %v533_v7 = vpop.f32.mrb[0].mxu1 }
 0x23d   :  { %v534_v8 = vpop.f32.mrb[1].mxu1 }
 0x23e   :  { %v535_v9 = vadd.f32 %v534_v8, %v533_v7  ;;  %v536_v10 = vpop.f32.mrb[2].mxu1 }
 0x23f   :  { %v537_v11 = vpop.f32.mrb[3].mxu1 }
 0x240   :  { %v538_v13 = vadd.f32 %v537_v11, %v536_v10  ;;  %v460_v14 = vadd.f32 %v535_v9, %v516_v12 }
 0x242   :  { %v461_v15 = vadd.f32 %v538_v13, %v516_v12  ;;  %462 = vst [vmem:[#allocation11] sm:$0xff] %v460_v14 }
 0x244   :  { %463 = vst [vmem:[#allocation11 + $0x8] sm:$0xff] %v461_v15 }
 0x245   :  { %721 = shalt.err (!%p718_p2)
}
 0x246   :  { %s722_s11 = scalar_lea.hbm %s864_s5, 256 }
 0x247   :  { %p723_p3 = scmp.ne.s32.totalorder %s864_s5, %s722_s11  ;;  %p726_p4 = scmp.lt.u32.totalorder %s722_s11, %s864_s5 }
 0x249   :  { %p728_p5 = pnand %p726_p4, %p723_p3 }
 0x24b   :  { %731 = shalt.err (!%p728_p5)
}
 0x24c   :  { %475 = dma.vmem_to_hbm [thread:$0]  %s470_s3, 256, %s864_s5, [#allocation4], %s741_s28, %s741_s28, %s742_s29  }
 0x24d   :  { %738 = dma.done.wait [#allocation4], 256  }
 0x24e   :  { %739 = vsyncadd [#allocation4], 4294967040 }
 0x24f   :  { %479 = vsyncpa [#allocation3], 1 }
 0x250   :  { %480 = vsyncpa [#allocation6], 1 }
 0x251   :  { %481 = vsyncpa [#allocation9], 1 }
 0x252   :  { %482 = vsyncpa [#allocation4], 1 }

</bundles_post_ra>
